<compile_context>
chip_gen: v7x
topology: tpu7x:2x2x1
jax: 0.10.0
libtpu: 0.0.40
codegen_flags: <defaults>
</compile_context>

<pallas_src>
import functools

import jax
import jax.numpy as jnp
from jax.experimental import pallas as pl
from jax.experimental.pallas import tpu as pltpu


def _round_up(x, m):
    return ((x + m - 1) // m) * m


def _pad_to(a, shape):
    pads = [(0, t - s) for s, t in zip(a.shape, shape)]
    return jnp.pad(a, pads)


def _device_kind():
    try:
        return jax.devices()[0].device_kind.lower()
    except Exception:
        return ""


def _resident_spec(shape):
    """BlockSpec for a weight/bias that is identical for every grid step.

    Single-buffered (pl.Buffered(1)) when the installed Pallas supports it —
    a constant index_map never needs a second pipeline buffer, so this halves
    the resident-weight VMEM footprint.
    """
    nd = len(shape)
    idx = lambda i, _nd=nd: (0,) * _nd
    try:
        return pl.BlockSpec(shape, idx, pipeline_mode=pl.Buffered(1))
    except Exception:
        return pl.BlockSpec(shape, idx)


def _becl_kernel(tau_ref, w0_ref, w1_ref, w24_ref, w3_ref, bh_ref, bf_ref, out_ref,
                 *, ew_dtype):
    """Whole 5-layer MLP forward for one batch tile, entirely in VMEM.

    tau_ref : (bm, tau_dim)    activation tile
    w0_ref  : (tau_dim, P_h)   embed layer 0 weight
    w1_ref  : (P_h, P_h)       embed layer 1 weight
    w24_ref : (2, P_h, P_f)    [embed layer 2, project_head layer 1] weights
    w3_ref  : (P_f, P_h)       project_head layer 0 weight
    bh_ref  : (3, 1, P_h)      [b0, b1, b3] biases (hidden-sized)
    bf_ref  : (2, 1, P_f)      [b2, b4] biases (feature-sized)
    out_ref : (bm, P_f)        lane-dense padded output tile

    MXU matmuls accumulate in f32; bias add / ReLU run in `ew_dtype`
    (bf16 on v6e/v7x which have a bf16 VALU, f32 on v5e and older).
    """
    wdt = w0_ref.dtype
    x = tau_ref[...]

    # embed: Linear -> ReLU -> Linear -> ReLU -> Linear
    h = jnp.dot(x, w0_ref[...], preferred_element_type=jnp.float32).astype(ew_dtype)
    h = jnp.maximum(h + bh_ref[0], 0.0).astype(wdt)

    h = jnp.dot(h, w1_ref[...], preferred_element_type=jnp.float32).astype(ew_dtype)
    h = jnp.maximum(h + bh_ref[1], 0.0).astype(wdt)

    f = (jnp.dot(h, w24_ref[0], preferred_element_type=jnp.float32).astype(ew_dtype)
         + bf_ref[0]).astype(wdt)

    # project_head: Linear -> ReLU -> Linear
    p = jnp.dot(f, w3_ref[...], preferred_element_type=jnp.float32).astype(ew_dtype)
    p = jnp.maximum(p + bh_ref[2], 0.0).astype(wdt)

    o = jnp.dot(p, w24_ref[1], preferred_element_type=jnp.float32).astype(ew_dtype) \
        + bf_ref[1]

    out_ref[...] = o.astype(out_ref.dtype)


def _plan_tiles(B, tau_dim, P_h, P_f, act_size, w_size, ew_size, out_size,
                batch_tile, row_align):
    """Pick the batch tile from a VMEM budget and compute a scoped-VMEM limit."""
    weight_bytes = (tau_dim * P_h + P_h * P_h + 2 * P_h * P_f + P_f * P_h) * w_size
    bias_bytes = (3 * P_h + 2 * P_f) * ew_size
    # Per-batch-row VMEM: double-buffered tau tile + double-buffered out tile
    # + a handful of live intermediates (conservative f32 estimate).
    per_row = (2 * tau_dim * act_size
               + 2 * P_f * out_size
               + 6 * max(P_h, P_f) * 4)
    budget = 40 * 1024 * 1024  # fits comfortably inside v7x's 64 MiB physical VMEM
    avail = max(budget - weight_bytes - bias_bytes, per_row * row_align)
    bm_cap = max(row_align, (avail // per_row // row_align) * row_align)

    bm = min(batch_tile, bm_cap)
    if bm >= B:
        bm = B
        if B >= 256:
            # Split a large single-tile batch into >= 4 grid steps so both v7x
            # TensorCores get >= 2 steps each (restores DMA/compute overlap).
            bm = max(row_align, _round_up(pl.cdiv(B, 4), row_align))
    else:
        bm = max(row_align, (bm // row_align) * row_align)

    need = weight_bytes + bias_bytes + bm * per_row
    vmem_limit = int(min(56 * 1024 * 1024, max(32 * 1024 * 1024, int(need * 1.5))))
    return bm, vmem_limit, weight_bytes, bias_bytes


def becl_forward(tau, params, *, batch_tile=1024, compute_dtype=jnp.bfloat16,
                 out_dtype=None):
    """Run the BECL MLP via a single fused Pallas kernel.

    tau:    [B, tau_dim]
    params: dict with w0..w4 ([in, out], i.e. PyTorch W.T) and b0..b4 ([1, out])
    compute_dtype: dtype for HBM activation/weight traffic and MXU operands
                   (accumulation stays f32). jnp.float32 for full-precision math,
                   jnp.bfloat16 to halve DMA bytes / use bf16 MXU.
    out_dtype: dtype of the returned array (default: compute_dtype).
    returns: [B, feature_dim]
    """
    B, tau_dim = tau.shape
    hidden_dim = params["w0"].shape[1]
    feature_dim = params["w4"].shape[1]

    cdt = jnp.dtype(compute_dtype) if compute_dtype is not None else tau.dtype
    odt = jnp.dtype(out_dtype) if out_dtype is not None else cdt

    kind = _device_kind()
    # v5e and older: 4x128^2 MXU, no bf16 VALU -> 128 pad granularity, f32 elementwise.
    legacy_tpu = any(t in kind for t in ("v2", "v3", "v4", "v5"))
    use_256_pad = not legacy_tpu

    def pad_dim(d):
        m = 256 if (use_256_pad and d >= 192) else 128
        return _round_up(d, m)

    # Decoupled padding: hidden vs feature lane dims (keeps the output writeback
    # and the last two matmuls at P_f, not max(P_h, P_f)).
    P_h = pad_dim(hidden_dim)
    P_f = pad_dim(feature_dim)

    # Elementwise (bias add / ReLU) dtype: bf16 on v6e/v7x, f32 otherwise.
    ew_dtype = cdt if (cdt == jnp.bfloat16 and not legacy_tpu) else jnp.float32

    # --- Pack weights / biases (zero-padded lanes propagate zeros; numerically safe).
    w0 = _pad_to(params["w0"], (tau_dim, P_h)).astype(cdt)
    w1 = _pad_to(params["w1"], (P_h, P_h)).astype(cdt)
    w24 = jnp.stack([_pad_to(params["w2"], (P_h, P_f)),
                     _pad_to(params["w4"], (P_h, P_f))]).astype(cdt)
    w3 = _pad_to(params["w3"], (P_f, P_h)).astype(cdt)
    bh = jnp.stack([_pad_to(params["b0"], (1, P_h)),
                    _pad_to(params["b1"], (1, P_h)),
                    _pad_to(params["b3"], (1, P_h))]).astype(ew_dtype)
    bf = jnp.stack([_pad_to(params["b2"], (1, P_f)),
                    _pad_to(params["b4"], (1, P_f))]).astype(ew_dtype)

    x = tau.astype(cdt)

    act_size = jnp.dtype(cdt).itemsize
    w_size = jnp.dtype(cdt).itemsize
    ew_size = jnp.dtype(ew_dtype).itemsize
    out_size = jnp.dtype(odt).itemsize
    row_align = 16 if cdt == jnp.bfloat16 else 8

    bm, vmem_limit, weight_bytes, bias_bytes = _plan_tiles(
        B, tau_dim, P_h, P_f, act_size, w_size, ew_size, out_size,
        batch_tile, row_align)
    grid = (pl.cdiv(B, bm),)

    flops = 2 * B * (tau_dim * P_h + P_h * P_h + P_h * P_f + P_f * P_h + P_h * P_f)
    bytes_accessed = (B * tau_dim * act_size + B * P_f * out_size
                      + weight_bytes + bias_bytes)
    cost = pl.CostEstimate(flops=flops, transcendentals=0,
                           bytes_accessed=bytes_accessed)

    kernel = functools.partial(_becl_kernel, ew_dtype=ew_dtype)

    out_padded = pl.pallas_call(
        kernel,
        out_shape=jax.ShapeDtypeStruct((B, P_f), odt),
        grid_spec=pltpu.PrefetchScalarGridSpec(
            num_scalar_prefetch=0,
            grid=grid,
            in_specs=[
                pl.BlockSpec((bm, tau_dim), lambda i: (i, 0)),  # tau tile (pipelined)
                _resident_spec((tau_dim, P_h)),                 # w0
                _resident_spec((P_h, P_h)),                     # w1
                _resident_spec((2, P_h, P_f)),                  # w2, w4 stacked
                _resident_spec((P_f, P_h)),                     # w3
                _resident_spec((3, 1, P_h)),                    # b0, b1, b3 stacked
                _resident_spec((2, 1, P_f)),                    # b2, b4 stacked
            ],
            out_specs=pl.BlockSpec((bm, P_f), lambda i: (i, 0)),
        ),
        compiler_params=pltpu.CompilerParams(
            dimension_semantics=("parallel",),
            vmem_limit_bytes=vmem_limit,
        ),
        cost_estimate=cost,
    )(x, w0, w1, w24, w3, bh, bf)

    # Drop the zero-padded lanes outside the kernel (pure layout plumbing).
    return out_padded[:, :feature_dim]


def init_becl_params(key, tau_dim, feature_dim, hidden_dim, dtype=jnp.float32):
    """Deterministic synthetic init matching the PyTorch module's layer shapes
    (weights stored transposed: [in, out])."""
    dims = [
        (tau_dim, hidden_dim),      # embed Linear 0
        (hidden_dim, hidden_dim),   # embed Linear 1
        (hidden_dim, feature_dim),  # embed Linear 2
        (feature_dim, hidden_dim),  # project_head Linear 0
        (hidden_dim, feature_dim),  # project_head Linear 1
    ]
    params = {}
    keys = jax.random.split(key, len(dims))
    for k, (din, dout) in enumerate(dims):
        w = jax.random.normal(keys[k], (din, dout), dtype) * (1.0 / jnp.sqrt(din))
        b = jnp.zeros((1, dout), dtype)
        params[f"w{k}"] = w
        params[f"b{k}"] = b
    return params


def becl_reference(tau, params):
    """Pure-JAX f32 reference for correctness checking."""
    x = tau
    x = jnp.maximum(x @ params["w0"] + params["b0"], 0.0)
    x = jnp.maximum(x @ params["w1"] + params["b1"], 0.0)
    x = x @ params["w2"] + params["b2"]
    x = jnp.maximum(x @ params["w3"] + params["b3"], 0.0)
    x = x @ params["w4"] + params["b4"]
    return x


if __name__ == "__main__":
    # Small shapes consistent with BECL(tau_dim, feature_dim, hidden_dim)
    tau_dim, feature_dim, hidden_dim = 8, 16, 32
    batch = 8

    key = jax.random.PRNGKey(0)
    k_param, k_tau = jax.random.split(key)

    params = init_becl_params(k_param, tau_dim, feature_dim, hidden_dim)
    tau = jax.random.normal(k_tau, (batch, tau_dim), jnp.float32)

    ref = becl_reference(tau, params)

    # 1) f32 compute path. Tolerance absorbs possible MXU f32-pass-count
    #    differences between the Pallas matmuls and the XLA reference matmuls.
    out_f32 = jax.block_until_ready(
        becl_forward(tau, params, compute_dtype=jnp.float32))
    assert out_f32.shape == (batch, feature_dim)
    assert out_f32.dtype == jnp.float32
    assert jnp.allclose(out_f32, ref, atol=5e-2, rtol=5e-2), "f32 mismatch vs reference"

    # 2) bf16 path (bf16 HBM I/O + bf16 MXU operands, f32 accumulation,
    #    bf16 output writeback). Looser tolerance for bf16 quantization.
    out_bf16 = jax.block_until_ready(
        becl_forward(tau, params, compute_dtype=jnp.bfloat16))
    assert out_bf16.shape == (batch, feature_dim)
    assert jnp.allclose(out_bf16.astype(jnp.float32), ref, atol=1e-1, rtol=1e-1), \
        "bf16 mismatch vs reference"

    print("KERNEL_OK")
</pallas_src>

<mosaic_0001>
module attributes {stable_mosaic.version = 11 : i64} {
  func.func @_becl_kernel(%arg0: i32, %arg1: memref<8x8xf32, #tpu.memory_space<vmem>>, %arg2: memref<8x128xf32, #tpu.memory_space<vmem>>, %arg3: memref<128x128xf32, #tpu.memory_space<vmem>>, %arg4: memref<2x128x128xf32, #tpu.memory_space<vmem>>, %arg5: memref<128x128xf32, #tpu.memory_space<vmem>>, %arg6: memref<3x1x128xf32, #tpu.memory_space<vmem>>, %arg7: memref<2x1x128xf32, #tpu.memory_space<vmem>>, %arg8: memref<8x128xf32, #tpu.memory_space<vmem>>) attributes {dimension_semantics = [#tpu.dimension_semantics<parallel>], iteration_bounds = array<i64: 1>, scalar_prefetch = 0 : i64, scratch_operands = 0 : i64, tpu.core_type = #tpu.core_type<tc>, window_params = [{transform_indices = @transform_0, window_bounds = array<i64: 8, 8>}, {pipeline_mode = #tpu.pipeline_mode<synchronous>, transform_indices = @transform_1, window_bounds = array<i64: 8, 128>}, {pipeline_mode = #tpu.pipeline_mode<synchronous>, transform_indices = @transform_2, window_bounds = array<i64: 128, 128>}, {pipeline_mode = #tpu.pipeline_mode<synchronous>, transform_indices = @transform_3, window_bounds = array<i64: 2, 128, 128>}, {pipeline_mode = #tpu.pipeline_mode<synchronous>, transform_indices = @transform_4, window_bounds = array<i64: 128, 128>}, {pipeline_mode = #tpu.pipeline_mode<synchronous>, transform_indices = @transform_5, window_bounds = array<i64: 3, 1, 128>}, {pipeline_mode = #tpu.pipeline_mode<synchronous>, transform_indices = @transform_6, window_bounds = array<i64: 2, 1, 128>}, {transform_indices = @transform_7, window_bounds = array<i64: 8, 128>}]} {
    %c0 = arith.constant 0 : index
    %c0_0 = arith.constant 0 : index
    %0 = vector.load %arg1[%c0, %c0_0] : memref<8x8xf32, #tpu.memory_space<vmem>>, vector<8x8xf32>
    %c0_1 = arith.constant 0 : index
    %c0_2 = arith.constant 0 : index
    %1 = vector.load %arg2[%c0_1, %c0_2] : memref<8x128xf32, #tpu.memory_space<vmem>>, vector<8x128xf32>
    %cst = arith.constant dense<0.000000e+00> : vector<8x128xf32>
    %2 = tpu.matmul %0, %1, %cst {dimension_numbers = #tpu.dot_dimension_numbers<[1], [0], [0], [1], [0, 0, 1, 1], [], []>} : vector<8x8xf32>, vector<8x128xf32>, vector<8x128xf32> -> vector<8x128xf32>
    %c0_3 = arith.constant 0 : index
    %c0_4 = arith.constant 0 : index
    %c0_5 = arith.constant 0 : index
    %3 = vector.load %arg6[%c0_3, %c0_4, %c0_5] : memref<3x1x128xf32, #tpu.memory_space<vmem>>, vector<1x1x128xf32>
    %4 = vector.shape_cast %3 : vector<1x1x128xf32> to vector<1x128xf32>
    %5 = vector.broadcast %4 : vector<1x128xf32> to vector<8x128xf32>
    %6 = arith.addf %2, %5 : vector<8x128xf32>
    %cst_6 = arith.constant 0.000000e+00 : f32
    %7 = vector.broadcast %cst_6 : f32 to vector<8x128xf32>
    %8 = arith.maximumf %6, %7 : vector<8x128xf32>
    %c0_7 = arith.constant 0 : index
    %c0_8 = arith.constant 0 : index
    %9 = vector.load %arg3[%c0_7, %c0_8] : memref<128x128xf32, #tpu.memory_space<vmem>>, vector<128x128xf32>
    %cst_9 = arith.constant dense<0.000000e+00> : vector<8x128xf32>
    %10 = tpu.matmul %8, %9, %cst_9 {dimension_numbers = #tpu.dot_dimension_numbers<[1], [0], [0], [1], [0, 0, 1, 1], [], []>} : vector<8x128xf32>, vector<128x128xf32>, vector<8x128xf32> -> vector<8x128xf32>
    %c1 = arith.constant 1 : index
    %c0_10 = arith.constant 0 : index
    %c0_11 = arith.constant 0 : index
    %11 = vector.load %arg6[%c1, %c0_10, %c0_11] : memref<3x1x128xf32, #tpu.memory_space<vmem>>, vector<1x1x128xf32>
    %12 = vector.shape_cast %11 : vector<1x1x128xf32> to vector<1x128xf32>
    %13 = vector.broadcast %12 : vector<1x128xf32> to vector<8x128xf32>
    %14 = arith.addf %10, %13 : vector<8x128xf32>
    %cst_12 = arith.constant 0.000000e+00 : f32
    %15 = vector.broadcast %cst_12 : f32 to vector<8x128xf32>
    %16 = arith.maximumf %14, %15 : vector<8x128xf32>
    %c0_13 = arith.constant 0 : index
    %c0_14 = arith.constant 0 : index
    %c0_15 = arith.constant 0 : index
    %17 = vector.load %arg4[%c0_13, %c0_14, %c0_15] : memref<2x128x128xf32, #tpu.memory_space<vmem>>, vector<1x128x128xf32>
    %18 = vector.shape_cast %17 : vector<1x128x128xf32> to vector<128x128xf32>
    %cst_16 = arith.constant dense<0.000000e+00> : vector<8x128xf32>
    %19 = tpu.matmul %16, %18, %cst_16 {dimension_numbers = #tpu.dot_dimension_numbers<[1], [0], [0], [1], [0, 0, 1, 1], [], []>} : vector<8x128xf32>, vector<128x128xf32>, vector<8x128xf32> -> vector<8x128xf32>
    %c0_17 = arith.constant 0 : index
    %c0_18 = arith.constant 0 : index
    %c0_19 = arith.constant 0 : index
    %20 = vector.load %arg7[%c0_17, %c0_18, %c0_19] : memref<2x1x128xf32, #tpu.memory_space<vmem>>, vector<1x1x128xf32>
    %21 = vector.shape_cast %20 : vector<1x1x128xf32> to vector<1x128xf32>
    %22 = vector.broadcast %21 : vector<1x128xf32> to vector<8x128xf32>
    %23 = arith.addf %19, %22 : vector<8x128xf32>
    %c0_20 = arith.constant 0 : index
    %c0_21 = arith.constant 0 : index
    %24 = vector.load %arg5[%c0_20, %c0_21] : memref<128x128xf32, #tpu.memory_space<vmem>>, vector<128x128xf32>
    %cst_22 = arith.constant dense<0.000000e+00> : vector<8x128xf32>
    %25 = tpu.matmul %23, %24, %cst_22 {dimension_numbers = #tpu.dot_dimension_numbers<[1], [0], [0], [1], [0, 0, 1, 1], [], []>} : vector<8x128xf32>, vector<128x128xf32>, vector<8x128xf32> -> vector<8x128xf32>
    %c2 = arith.constant 2 : index
    %c0_23 = arith.constant 0 : index
    %c0_24 = arith.constant 0 : index
    %26 = vector.load %arg6[%c2, %c0_23, %c0_24] : memref<3x1x128xf32, #tpu.memory_space<vmem>>, vector<1x1x128xf32>
    %27 = vector.shape_cast %26 : vector<1x1x128xf32> to vector<1x128xf32>
    %28 = vector.broadcast %27 : vector<1x128xf32> to vector<8x128xf32>
    %29 = arith.addf %25, %28 : vector<8x128xf32>
    %cst_25 = arith.constant 0.000000e+00 : f32
    %30 = vector.broadcast %cst_25 : f32 to vector<8x128xf32>
    %31 = arith.maximumf %29, %30 : vector<8x128xf32>
    %c1_26 = arith.constant 1 : index
    %c0_27 = arith.constant 0 : index
    %c0_28 = arith.constant 0 : index
    %32 = vector.load %arg4[%c1_26, %c0_27, %c0_28] : memref<2x128x128xf32, #tpu.memory_space<vmem>>, vector<1x128x128xf32>
    %33 = vector.shape_cast %32 : vector<1x128x128xf32> to vector<128x128xf32>
    %cst_29 = arith.constant dense<0.000000e+00> : vector<8x128xf32>
    %34 = tpu.matmul %31, %33, %cst_29 {dimension_numbers = #tpu.dot_dimension_numbers<[1], [0], [0], [1], [0, 0, 1, 1], [], []>} : vector<8x128xf32>, vector<128x128xf32>, vector<8x128xf32> -> vector<8x128xf32>
    %c1_30 = arith.constant 1 : index
    %c0_31 = arith.constant 0 : index
    %c0_32 = arith.constant 0 : index
    %35 = vector.load %arg7[%c1_30, %c0_31, %c0_32] : memref<2x1x128xf32, #tpu.memory_space<vmem>>, vector<1x1x128xf32>
    %36 = vector.shape_cast %35 : vector<1x1x128xf32> to vector<1x128xf32>
    %37 = vector.broadcast %36 : vector<1x128xf32> to vector<8x128xf32>
    %38 = arith.addf %34, %37 : vector<8x128xf32>
    %c0_33 = arith.constant 0 : index
    %c0_34 = arith.constant 0 : index
    %39 = vector.load %arg8[%c0_33, %c0_34] : memref<8x128xf32, #tpu.memory_space<vmem>>, vector<8x128xf32>
    tpu.vector_store %arg8[%c0_33, %c0_34], %38 {strides = array<i32>} : memref<8x128xf32, #tpu.memory_space<vmem>>, vector<8x128xf32>,
    return
  }
  func.func @transform_0(%arg0: i32) -> (i32, i32) {
    %c0_i32 = arith.constant 0 : i32
    %c0_i32_0 = arith.constant 0 : i32
    return %arg0, %c0_i32 : i32, i32
  }
  func.func @transform_1(%arg0: i32) -> (i32, i32) {
    %c0_i32 = arith.constant 0 : i32
    %c0_i32_0 = arith.constant 0 : i32
    %c0_i32_1 = arith.constant 0 : i32
    return %c0_i32, %c0_i32_0 : i32, i32
  }
  func.func @transform_2(%arg0: i32) -> (i32, i32) {
    %c0_i32 = arith.constant 0 : i32
    %c0_i32_0 = arith.constant 0 : i32
    %c0_i32_1 = arith.constant 0 : i32
    return %c0_i32, %c0_i32_0 : i32, i32
  }
  func.func @transform_3(%arg0: i32) -> (i32, i32, i32) {
    %c0_i32 = arith.constant 0 : i32
    %c0_i32_0 = arith.constant 0 : i32
    %c0_i32_1 = arith.constant 0 : i32
    %c0_i32_2 = arith.constant 0 : i32
    return %c0_i32, %c0_i32_0, %c0_i32_1 : i32, i32, i32
  }
  func.func @transform_4(%arg0: i32) -> (i32, i32) {
    %c0_i32 = arith.constant 0 : i32
    %c0_i32_0 = arith.constant 0 : i32
    %c0_i32_1 = arith.constant 0 : i32
    return %c0_i32, %c0_i32_0 : i32, i32
  }
  func.func @transform_5(%arg0: i32) -> (i32, i32, i32) {
    %c0_i32 = arith.constant 0 : i32
    %c0_i32_0 = arith.constant 0 : i32
    %c0_i32_1 = arith.constant 0 : i32
    %c0_i32_2 = arith.constant 0 : i32
    return %c0_i32, %c0_i32_0, %c0_i32_1 : i32, i32, i32
  }
  func.func @transform_6(%arg0: i32) -> (i32, i32, i32) {
    %c0_i32 = arith.constant 0 : i32
    %c0_i32_0 = arith.constant 0 : i32
    %c0_i32_1 = arith.constant 0 : i32
    %c0_i32_2 = arith.constant 0 : i32
    return %c0_i32, %c0_i32_0, %c0_i32_1 : i32, i32, i32
  }
  func.func @transform_7(%arg0: i32) -> (i32, i32) {
    %c0_i32 = arith.constant 0 : i32
    %c0_i32_0 = arith.constant 0 : i32
    return %arg0, %c0_i32 : i32, i32
  }
}

</mosaic_0001>

<bundles_post_ra>
// kernel: tpu_custom_call.1
= control target key start
LH: loop header
LB: loop body
LE: loop exit
PB: predicated region body
PF: predicated region fallthrough
CT: control target
= control target key end

     0   :  { %12 = vsyncpa [#allocation3], 0  ;;  %s1232_s0 = inlined_call_operand.hbm [shape: f32[8,8], index: 0, kind: input, shape index: {}]   ;;  %s1233_s1 = inlined_call_operand.hbm [shape: f32[8,128], index: 1, kind: input, shape index: {}]   ;;  %s1234_s2 = inlined_call_operand.hbm [shape: f32[128,128], index: 2, kind: input, shape index: {}]   ;;  %s1235_s3 = inlined_call_operand.hbm [shape: f32[2,128,128], index: 3, kind: input, shape index: {}]   ;;  %s1236_s4 = inlined_call_operand.hbm [shape: f32[128,128], index: 4, kind: input, shape index: {}]   ;;  %s1237_s5 = inlined_call_operand.vmem [shape: f32[3,1,128], index: 5, kind: input, shape index: {}]   ;;  %s1238_s6 = inlined_call_operand.vmem [shape: f32[2,1,128], index: 6, kind: input, shape index: {}]   ;;  %s1239_s7 = inlined_call_operand.hbm [shape: f32[8,128], index: 7, kind: output, shape index: {}]  }
   0x1   :  { %13 = vsyncpa [#allocation6], 0 }
   0x2   :  { %14 = vsyncpa [#allocation9], 0 }
   0x3   :  { %15 = vsyncpa [#allocation4], 0  ;;  %s1042_s24 = smov [#allocation5]   ;;  %s902_s28 = scalar_lea.hbm %s1233_s1, 128 }
   0x4   :  { %s32_s25 = sshll.u32 %s1042_s24, 4  ;;  %p903_p0 = scmp.ne.s32.totalorder %s1233_s1, %s902_s28  ;;  %s33_s25 = int_to_ptr.vmem [resolvable:$true] %s32_s25 }
   0x5   :  { %p906_p1 = scmp.lt.u32.totalorder %s902_s28, %s1233_s1 }
   0x7   :  { %p908_p2 = pnand %p906_p1, %p903_p0 }
   0x9   :  { %911 = shalt.err (!%p908_p2)
}
   0xa   :  { %s912_s10 = scalar_lea.vmem %s33_s25, 128  ;;  %p917_p4 = scmp.lt.s32.totalorder %s33_s25, %s33_s25 }
   0xb   :  { %p913_p3 = scmp.ne.s32.totalorder %s33_s25, %s912_s10  ;;  %p918_p5 = scmp.lt.s32.totalorder %s912_s10, %s912_s10 }
   0xd   :  { %p919_p6 = por %p918_p5, %p917_p4 }
   0xf   :  { %p920_p7 = pnand %p919_p6, %p913_p3 }
  0x11   :  { %923 = shalt.err (!%p920_p7)
}
  0x12   :  { %35 = dma.hbm_to_vmem [thread:$0]  %s1233_s1, 128, %s33_s25, [#allocation6]  }
  0x13   :  { %s1043_s13 = smov [#allocation8]   ;;  %s1044_s15 = smov [#allocation2]  }
  0x14   :  { %s53_s14 = sshll.u32 %s1043_s13, 4  ;;  %s22_s16 = sshll.u32 %s1044_s15, 4  ;;  %s54_s14 = int_to_ptr.vmem [resolvable:$true] %s53_s14  ;;  %s23_s16 = int_to_ptr.vmem [resolvable:$true] %s22_s16 }
  0x15   :  { %s924_s19 = scalar_lea.hbm %s1235_s3, 4096 }
  0x16   :  { %p925_p8 = scmp.ne.s32.totalorder %s1235_s3, %s924_s19  ;;  %p928_p9 = scmp.lt.u32.totalorder %s924_s19, %s1235_s3 }
  0x18   :  { %p930_p10 = pnand %p928_p9, %p925_p8 }
  0x1a   :  { %933 = shalt.err (!%p930_p10)
}
  0x1b   :  { %s934_s1 = scalar_lea.vmem %s54_s14, 4096  ;;  %p939_p12 = scmp.lt.s32.totalorder %s54_s14, %s54_s14 }
  0x1c   :  { %p935_p11 = scmp.ne.s32.totalorder %s54_s14, %s934_s1  ;;  %p940_p13 = scmp.lt.s32.totalorder %s934_s1, %s934_s1 }
  0x1e   :  { %p941_p0 = por %p940_p13, %p939_p12 }
  0x20   :  { %p942_p1 = pnand %p941_p0, %p935_p11 }
  0x22   :  { %945 = shalt.err (!%p942_p1)
}
  0x23   :  { %s1045_s24 = smov 128   ;;  %s1046_s25 = smov 8  }
  0x24   :  { %59 = dma.hbm_to_vmem [thread:$0]  %s1235_s3, 4096, %s54_s14, [#allocation9], %s1045_s24, %s1045_s24, %s1046_s25  }
  0x25   :  { %s946_s30 = scalar_lea.hbm %s1232_s0, 128 }
  0x26   :  { %p947_p2 = scmp.ne.s32.totalorder %s1232_s0, %s946_s30  ;;  %p950_p3 = scmp.lt.u32.totalorder %s946_s30, %s1232_s0 }
  0x28   :  { %p952_p4 = pnand %p950_p3, %p947_p2 }
  0x2a   :  { %955 = shalt.err (!%p952_p4)
}
  0x2b   :  { %s956_s12 = scalar_lea.vmem %s23_s16, 128  ;;  %p961_p6 = scmp.lt.s32.totalorder %s23_s16, %s23_s16 }
  0x2c   :  { %p957_p5 = scmp.ne.s32.totalorder %s23_s16, %s956_s12  ;;  %p962_p7 = scmp.lt.s32.totalorder %s956_s12, %s956_s12 }
  0x2e   :  { %p963_p8 = por %p962_p7, %p961_p6 }
  0x30   :  { %p964_p9 = pnand %p963_p8, %p957_p5 }
  0x32   :  { %967 = shalt.err (!%p964_p9)
}
  0x33   :  { %25 = dma.hbm_to_vmem [thread:$0]  %s1232_s0, 128, %s23_s16, [#allocation3]  }
  0x34   :  { %s1047_s14 = smov [#allocation7]   ;;  %s1048_s17 = smov [#allocation10]  }
  0x35   :  { %s41_s15 = sshll.u32 %s1047_s14, 4  ;;  %s65_s18 = sshll.u32 %s1048_s17, 4  ;;  %s42_s15 = int_to_ptr.vmem [resolvable:$true] %s41_s15  ;;  %s66_s18 = int_to_ptr.vmem [resolvable:$true] %s65_s18 }
  0x36   :  { %s968_s21 = scalar_lea.hbm %s1234_s2, 2048 }
  0x37   :  { %p969_p10 = scmp.ne.s32.totalorder %s1234_s2, %s968_s21  ;;  %p972_p11 = scmp.lt.u32.totalorder %s968_s21, %s1234_s2 }
  0x39   :  { %p974_p12 = pnand %p972_p11, %p969_p10 }
  0x3b   :  { %977 = shalt.err (!%p974_p12)
}
  0x3c   :  { %s978_s0 = scalar_lea.vmem %s42_s15, 2048  ;;  %p983_p0 = scmp.lt.s32.totalorder %s42_s15, %s42_s15 }
  0x3d   :  { %p979_p13 = scmp.ne.s32.totalorder %s42_s15, %s978_s0  ;;  %p984_p1 = scmp.lt.s32.totalorder %s978_s0, %s978_s0 }
  0x3f   :  { %p985_p2 = por %p984_p1, %p983_p0 }
  0x41   :  { %p986_p3 = pnand %p985_p2, %p979_p13 }
  0x43   :  { %989 = shalt.err (!%p986_p3)
}
  0x44   :  { %47 = dma.hbm_to_vmem [thread:$0]  %s1234_s2, 2048, %s42_s15, [#allocation6], %s1045_s24, %s1045_s24, %s1046_s25  }
  0x45   :  { %s990_s30 = scalar_lea.hbm %s1236_s4, 2048 }
  0x46   :  { %p991_p4 = scmp.ne.s32.totalorder %s1236_s4, %s990_s30  ;;  %p994_p5 = scmp.lt.u32.totalorder %s990_s30, %s1236_s4 }
  0x48   :  { %p996_p6 = pnand %p994_p5, %p991_p4 }
  0x4a   :  { %999 = shalt.err (!%p996_p6)
}
  0x4b   :  { %s1000_s12 = scalar_lea.vmem %s66_s18, 2048  ;;  %p1005_p8 = scmp.lt.s32.totalorder %s66_s18, %s66_s18 }
  0x4c   :  { %p1001_p7 = scmp.ne.s32.totalorder %s66_s18, %s1000_s12  ;;  %p1006_p9 = scmp.lt.s32.totalorder %s1000_s12, %s1000_s12 }
  0x4e   :  { %p1007_p10 = por %p1006_p9, %p1005_p8 }
  0x50   :  { %p1008_p11 = pnand %p1007_p10, %p1001_p7 }
  0x52   :  { %1011 = shalt.err (!%p1008_p11)
}
  0x53   :  { %71 = dma.hbm_to_vmem [thread:$0]  %s1236_s4, 2048, %s66_s18, [#allocation9], %s1045_s24, %s1045_s24, %s1046_s25  }
  0x54   :  { %1034 = dma.done.wait [#allocation3], 128  }
  0x55   :  { %1035 = vsyncadd [#allocation3], 4294967168 }
  0x56   :  { %1036 = dma.done.wait [#allocation6], 2176  }
  0x57   :  { %1037 = vsyncadd [#allocation6], 4294965120 }
  0x58   :  { %1038 = dma.done.wait [#allocation9], 6144  }
  0x59   :  { %1039 = vsyncadd [#allocation9], 4294961152  ;;  %v1049_v0 = vmov 0.0   ;;  %vm1050_vm0 = vmmov 0   ;;  %v1051_v1 = vmov 0.0|0.0   ;;  %vm100_vm1 = vcmask 64512  }
  0x5a   :  { %650 = vmatprep.subr.mxu0 %v1049_v0  ;;  %652 = vmatprep.mubr.msk.f32.mxu0 %vm1050_vm0, %v1049_v0  ;;  %v92_v2 = vld [vmem:[#allocation5] sm:$0xff]  ;;  %v91_v3 = vld [vmem:[#allocation2] sm:$0xff]  ;;  %v175_v4 = vld [vmem:[#allocation7] sm:$0xff]  ;;  %s1052_s21 = smov [#allocation11]  }
  0x5b   :  { %795 = vmatprep.subr.bf16.mxu1 %v1051_v1  ;;  %687 = vmatprep.mubr.msk.f32.mxu1 %vm1050_vm0, %v1049_v0  ;;  %v176_v5 = vld [vmem:[#allocation7 + $0x8] sm:$0xff]  ;;  %v177_v6 = vld [vmem:[#allocation7 + $0x10] sm:$0xff]  ;;  %v178_v7 = vld [vmem:[#allocation7 + $0x18] sm:$0xff]  ;;  %s560_s22 = sshll.u32 %s1052_s21, 4  ;;  %s561_s22 = int_to_ptr.vmem [resolvable:$true] %s560_s22 }
  0x5c   :  { %651 = vmatpush3.msra.mxu0 %v92_v2  ;;  %v796_v8 = vpack.c.bf16 %v176_v5, %v175_v4  ;;  %v799_v9 = vpack.c.bf16 %v178_v7, %v177_v6  ;;  %v179_v10 = vld [vmem:[#allocation7 + $0x20] sm:$0xff]  ;;  %v180_v11 = vld [vmem:[#allocation7 + $0x28] sm:$0xff]  ;;  %v181_v13 = vld [vmem:[#allocation7 + $0x30] sm:$0xff]  ;;  %s1012_s23 = scalar_lea.vmem %s561_s22, 128  ;;  %p1017_p13 = scmp.lt.s32.totalorder %s561_s22, %s561_s22 }
  0x5d   :  { %653 = vmatmul.mubr.msk.f32.vlgmr.msra.gmra.mrb[0].mxu0 %vm100_vm1, %v91_v3  ;;  %819 = vmatprep.subr.bf16.mxu0 %v1051_v1  ;;  %v802_v12 = vpack.c.bf16 %v180_v11, %v179_v10  ;;  %v182_v14 = vld [vmem:[#allocation7 + $0x38] sm:$0xff]  ;;  %v183_v16 = vld [vmem:[#allocation7 + $0x40] sm:$0xff]  ;;  %v184_v17 = vld [vmem:[#allocation7 + $0x48] sm:$0xff]  ;;  %p1013_p12 = scmp.ne.s32.totalorder %s561_s22, %s1012_s23  ;;  %p1018_p0 = scmp.lt.s32.totalorder %s1012_s23, %s1012_s23 }
  0x5e   :  { %722 = vmatprep.mubr.msk.f32.mxu0 %vm1050_vm0, %v1049_v0  ;;  %797 = vmatpush3.bf16.msra.mxu1 %v796_v8  ;;  %v805_v15 = vpack.c.bf16 %v182_v14, %v181_v13  ;;  %v808_v18 = vpack.c.bf16 %v184_v17, %v183_v16  ;;  %v185_v19 = vld [vmem:[#allocation7 + $0x50] sm:$0xff]  ;;  %v186_v20 = vld [vmem:[#allocation7 + $0x58] sm:$0xff]  ;;  %v187_v22 = vld [vmem:[#allocation7 + $0x60] sm:$0xff] }
  0x5f   :  { %798 = vmatprep.subr.bf16.mxu1 %v1051_v1  ;;  %v811_v21 = vpack.c.bf16 %v186_v20, %v185_v19  ;;  %v188_v23 = vld [vmem:[#allocation7 + $0x68] sm:$0xff]  ;;  %v189_v25 = vld [vmem:[#allocation7 + $0x70] sm:$0xff]  ;;  %v190_v26 = vld [vmem:[#allocation7 + $0x78] sm:$0xff]  ;;  %p1019_p1 = por %p1018_p0, %p1017_p13 }
  0x60   :  { %v814_v24 = vpack.c.bf16 %v188_v23, %v187_v22  ;;  %v817_v27 = vpack.c.bf16 %v190_v26, %v189_v25  ;;  %v270_v28 = vld [vmem:[#allocation8] sm:$0xff]  ;;  %v271_v29 = vld [vmem:[#allocation8 + $0x8] sm:$0xff]  ;;  %v272_v30 = vld [vmem:[#allocation8 + $0x10] sm:$0xff] }
  0x61   :  { %v820_v31 = vpack.c.bf16 %v271_v29, %v270_v28  ;;  %v273_v32 = vld [vmem:[#allocation8 + $0x18] sm:$0xff]  ;;  %v274_v34 = vld [vmem:[#allocation8 + $0x20] sm:$0xff]  ;;  %v275_v35 = vld [vmem:[#allocation8 + $0x28] sm:$0xff]  ;;  %p1020_p2 = pnand %p1019_p1, %p1013_p12 }
  0x62   :  { %800 = vmatpush3.bf16.msra.mxu1 %v799_v9  ;;  %v823_v33 = vpack.c.bf16 %v273_v32, %v272_v30  ;;  %v826_v36 = vpack.c.bf16 %v275_v35, %v274_v34  ;;  %v276_v37 = vld [vmem:[#allocation8 + $0x30] sm:$0xff]  ;;  %v277_v38 = vld [vmem:[#allocation8 + $0x38] sm:$0xff]  ;;  %v278_v40 = vld [vmem:[#allocation8 + $0x40] sm:$0xff] }
  0x63   :  { %801 = vmatprep.subr.bf16.mxu1 %v1051_v1  ;;  %821 = vmatpush3.bf16.msra.mxu0 %v820_v31  ;;  %v829_v39 = vpack.c.bf16 %v277_v38, %v276_v37  ;;  %v279_v41 = vld [vmem:[#allocation8 + $0x48] sm:$0xff]  ;;  %v280_v43 = vld [vmem:[#allocation8 + $0x50] sm:$0xff]  ;;  %v281_v44 = vld [vmem:[#allocation8 + $0x58] sm:$0xff] }
  0x64   :  { %822 = vmatprep.subr.bf16.mxu0 %v1051_v1  ;;  %v832_v42 = vpack.c.bf16 %v279_v41, %v278_v40  ;;  %v835_v45 = vpack.c.bf16 %v281_v44, %v280_v43  ;;  %v282_v46 = vld [vmem:[#allocation8 + $0x60] sm:$0xff]  ;;  %v283_v47 = vld [vmem:[#allocation8 + $0x68] sm:$0xff]  ;;  %v571_v49 = vld [vmem:[%s1237_s5] ss:$0 sm:$0xff] }
  0x65   :  { %v838_v48 = vpack.c.bf16 %v283_v47, %v282_v46  ;;  %v284_v54 = vld [vmem:[#allocation8 + $0x70] sm:$0xff]  ;;  %v285_v55 = vld [vmem:[#allocation8 + $0x78] sm:$0xff]  ;;  %v363_v57 = vld [vmem:[#allocation10] sm:$0xff] }
  0x66   :  { %803 = vmatpush3.bf16.msra.mxu1 %v802_v12  ;;  %v841_v56 = vpack.c.bf16 %v285_v55, %v284_v54  ;;  %v364_v58 = vld [vmem:[#allocation10 + $0x8] sm:$0xff]  ;;  %v365_v59 = vld [vmem:[#allocation10 + $0x10] sm:$0xff]  ;;  %v366_v61 = vld [vmem:[#allocation10 + $0x18] sm:$0xff] }
  0x67   :  { %804 = vmatprep.subr.bf16.mxu1 %v1051_v1  ;;  %824 = vmatpush3.bf16.msra.mxu0 %v823_v33  ;;  %v844_v60 = vpack.c.bf16 %v364_v58, %v363_v57  ;;  %v847_v62 = vpack.c.bf16 %v366_v61, %v365_v59  ;;  %v367_v63 = vld [vmem:[#allocation10 + $0x20] sm:$0xff]  ;;  %v368_v2 = vld [vmem:[#allocation10 + $0x28] sm:$0xff]  ;;  %v369_v4 = vld [vmem:[#allocation10 + $0x30] sm:$0xff] }
  0x68   :  { %825 = vmatprep.subr.bf16.mxu0 %v1051_v1  ;;  %v850_v3 = vpack.c.bf16 %v368_v2, %v367_v63  ;;  %v370_v5 = vld [vmem:[#allocation10 + $0x38] sm:$0xff]  ;;  %v371_v7 = vld [vmem:[#allocation10 + $0x40] sm:$0xff]  ;;  %v372_v8 = vld [vmem:[#allocation10 + $0x48] sm:$0xff] }
  0x69   :  { %v853_v6 = vpack.c.bf16 %v370_v5, %v369_v4  ;;  %v856_v9 = vpack.c.bf16 %v372_v8, %v371_v7  ;;  %v373_v10 = vld [vmem:[#allocation10 + $0x50] sm:$0xff]  ;;  %v374_v11 = vld [vmem:[#allocation10 + $0x58] sm:$0xff]  ;;  %v375_v13 = vld [vmem:[#allocation10 + $0x60] sm:$0xff] }
  0x6a   :  { %806 = vmatpush3.bf16.msra.mxu1 %v805_v15  ;;  %v859_v12 = vpack.c.bf16 %v374_v11, %v373_v10  ;;  %v376_v14 = vld [vmem:[#allocation10 + $0x68] sm:$0xff]  ;;  %v574_v16 = vld [vmem:[%s1237_s5 + $0x1] ss:$0 sm:$0xff]  ;;  %v378_v22 = vld [vmem:[#allocation10 + $0x78] sm:$0xff] }
  0x6b   :  { %807 = vmatprep.subr.bf16.mxu1 %v1051_v1  ;;  %827 = vmatpush3.bf16.msra.mxu0 %v826_v36  ;;  %v862_v15 = vpack.c.bf16 %v376_v14, %v375_v13  ;;  %v460_v25 = vld [vmem:[#allocation8 + $0x88] sm:$0xff]  ;;  %v461_v26 = vld [vmem:[#allocation8 + $0x90] sm:$0xff]  ;;  %v462_v28 = vld [vmem:[#allocation8 + $0x98] sm:$0xff] }
  0x6c   :  { %828 = vmatprep.subr.bf16.mxu0 %v1051_v1  ;;  %v871_v29 = vpack.c.bf16 %v462_v28, %v461_v26  ;;  %v463_v30 = vld [vmem:[#allocation8 + $0xa0] sm:$0xff]  ;;  %v464_v31 = vld [vmem:[#allocation8 + $0xa8] sm:$0xff]  ;;  %v466_v33 = vld [vmem:[#allocation8 + $0xb8] sm:$0xff] }
  0x6d   :  { %v874_v32 = vpack.c.bf16 %v464_v31, %v463_v30  ;;  %v467_v35 = vld [vmem:[#allocation8 + $0xc0] sm:$0xff]  ;;  %v468_v36 = vld [vmem:[#allocation8 + $0xc8] sm:$0xff]  ;;  %v469_v38 = vld [vmem:[#allocation8 + $0xd0] sm:$0xff] }
  0x6e   :  { %809 = vmatpush3.bf16.msra.mxu1 %v808_v18  ;;  %v880_v37 = vpack.c.bf16 %v468_v36, %v467_v35  ;;  %v471_v41 = vld [vmem:[#allocation8 + $0xe0] sm:$0xff]  ;;  %v575_v44 = vld [vmem:[%s1238_s6] ss:$0 sm:$0xff]  ;;  %v579_v55 = vld [vmem:[%s1238_s6 + $0x1] ss:$0 sm:$0xff] }
  0x6f   :  { %810 = vmatprep.subr.bf16.mxu1 %v1051_v1  ;;  %830 = vmatpush3.bf16.msra.mxu0 %v829_v39  ;;  %v470_v39 = vld [vmem:[#allocation8 + $0xd8] sm:$0xff] }
  0x70   :  { %831 = vmatprep.subr.bf16.mxu0 %v1051_v1  ;;  %v883_v40 = vpack.c.bf16 %v470_v39, %v469_v38 }
  0x72   :  { %812 = vmatpush3.bf16.msra.mxu1 %v811_v21  ;;  %v377_v21 = vld [vmem:[#allocation10 + $0x70] sm:$0xff] }
  0x73   :  { %813 = vmatprep.subr.bf16.mxu1 %v1051_v1  ;;  %833 = vmatpush3.bf16.msra.mxu0 %v832_v42  ;;  %v865_v23 = vpack.c.bf16 %v378_v22, %v377_v21  ;;  %v472_v42 = vld [vmem:[#allocation8 + $0xe8] sm:$0xff] }
  0x74   :  { %834 = vmatprep.subr.bf16.mxu0 %v1051_v1  ;;  %v886_v43 = vpack.c.bf16 %v472_v42, %v471_v41 }
  0x76   :  { %815 = vmatpush3.bf16.msra.mxu1 %v814_v24  ;;  %v459_v24 = vld [vmem:[#allocation8 + $0x80] sm:$0xff] }
  0x77   :  { %816 = vmatprep.subr.bf16.mxu1 %v1051_v1  ;;  %836 = vmatpush3.bf16.msra.mxu0 %v835_v45 }
  0x78   :  { %837 = vmatprep.subr.bf16.mxu0 %v1051_v1 }
  0x7a   :  { %818 = vmatpush3.bf16.msra.mxu1 %v817_v27  ;;  %v868_v27 = vpack.c.bf16 %v460_v25, %v459_v24 }
  0x7b   :  { %843 = vmatprep.subr.bf16.mxu1 %v1051_v1  ;;  %839 = vmatpush3.bf16.msra.mxu0 %v838_v48  ;;  %v473_v48 = vld [vmem:[#allocation8 + $0xf0] sm:$0xff] }
  0x7c   :  { %840 = vmatprep.subr.bf16.mxu0 %v1051_v1 }
  0x7f   :  { %842 = vmatpush3.bf16.msra.mxu0 %v841_v56 }
  0x80   :  { %867 = vmatprep.subr.bf16.mxu0 %v1051_v1 }
 0x130   :  { %v170_v50 = vpop.f32.mrb[0].mxu0 }
 0x131   :  { %v171_v51 = vadd.f32 %v571_v49, %v170_v50  ;;  %v654_v52 = vpop.f32.mrb[1].mxu0  ;;  %v474_v49 = vld [vmem:[#allocation8 + $0xf8] sm:$0xff] }
 0x132   :  { %v889_v50 = vpack.c.bf16 %v474_v49, %v473_v48 }
 0x133   :  { %v174_v53 = vmax.f32 %v171_v51, 0.0  ;;  %v577_v51 = vld [vmem:[%s1237_s5 + $0x2] ss:$0 sm:$0xff] }
 0x135   :  { %688 = vmatmul.mubr.f32.vlgmr.msra.gmra.mrb[0].mxu1 %v174_v53 }
 0x136   :  { %757 = vmatprep.mubr.msk.f32.mxu1 %vm1050_vm0, %v1049_v0  ;;  %845 = vmatpush3.bf16.msra.mxu1 %v844_v60 }
 0x137   :  { %846 = vmatprep.subr.bf16.mxu1 %v1051_v1 }
 0x13a   :  { %848 = vmatpush3.bf16.msra.mxu1 %v847_v62 }
 0x13b   :  { %849 = vmatprep.subr.bf16.mxu1 %v1051_v1 }
 0x13e   :  { %851 = vmatpush3.bf16.msra.mxu1 %v850_v3 }
 0x13f   :  { %852 = vmatprep.subr.bf16.mxu1 %v1051_v1 }
 0x142   :  { %854 = vmatpush3.bf16.msra.mxu1 %v853_v6 }
 0x143   :  { %855 = vmatprep.subr.bf16.mxu1 %v1051_v1 }
 0x146   :  { %857 = vmatpush3.bf16.msra.mxu1 %v856_v9 }
 0x147   :  { %858 = vmatprep.subr.bf16.mxu1 %v1051_v1 }
 0x14a   :  { %860 = vmatpush3.bf16.msra.mxu1 %v859_v12 }
 0x14b   :  { %861 = vmatprep.subr.bf16.mxu1 %v1051_v1 }
 0x14e   :  { %863 = vmatpush3.bf16.msra.mxu1 %v862_v15 }
 0x14f   :  { %864 = vmatprep.subr.bf16.mxu1 %v1051_v1 }
 0x152   :  { %866 = vmatpush3.bf16.msra.mxu1 %v865_v23 }
 0x208   :  { %v265_v17 = vpop.f32.mrb[0].mxu1 }
 0x209   :  { %v266_v18 = vadd.f32 %v574_v16, %v265_v17  ;;  %v689_v19 = vpop.f32.mrb[1].mxu1 }
 0x20b   :  { %v269_v20 = vmax.f32 %v266_v18, 0.0 }
 0x20d   :  { %723 = vmatmul.mubr.f32.vlgmr.msra.gmra.mrb[2].mxu0 %v269_v20 }
 0x20e   :  { %792 = vmatprep.mubr.msk.f32.mxu0 %vm1050_vm0, %v1049_v0  ;;  %869 = vmatpush3.bf16.msra.mxu0 %v868_v27  ;;  %v465_v0 = vld [vmem:[#allocation8 + $0xb0] sm:$0xff] }
 0x20f   :  { %870 = vmatprep.subr.bf16.mxu0 %v1051_v1  ;;  %v877_v34 = vpack.c.bf16 %v466_v33, %v465_v0 }
 0x212   :  { %872 = vmatpush3.bf16.msra.mxu0 %v871_v29 }
 0x213   :  { %873 = vmatprep.subr.bf16.mxu0 %v1051_v1 }
 0x216   :  { %875 = vmatpush3.bf16.msra.mxu0 %v874_v32 }
 0x217   :  { %876 = vmatprep.subr.bf16.mxu0 %v1051_v1 }
 0x21a   :  { %878 = vmatpush3.bf16.msra.mxu0 %v877_v34 }
 0x21b   :  { %879 = vmatprep.subr.bf16.mxu0 %v1051_v1 }
 0x21e   :  { %881 = vmatpush3.bf16.msra.mxu0 %v880_v37 }
 0x21f   :  { %882 = vmatprep.subr.bf16.mxu0 %v1051_v1 }
 0x222   :  { %884 = vmatpush3.bf16.msra.mxu0 %v883_v40 }
 0x223   :  { %885 = vmatprep.subr.bf16.mxu0 %v1051_v1 }
 0x226   :  { %887 = vmatpush3.bf16.msra.mxu0 %v886_v43 }
 0x227   :  { %888 = vmatprep.subr.bf16.mxu0 %v1051_v1 }
 0x22a   :  { %890 = vmatpush3.bf16.msra.mxu0 %v889_v50 }
 0x2e0   :  { %v359_v45 = vpop.f32.mrb[2].mxu0 }
 0x2e1   :  { %v360_v46 = vadd.f32 %v575_v44, %v359_v45  ;;  %v724_v47 = vpop.f32.mrb[3].mxu0 }
 0x2e3   :  { %758 = vmatmul.mubr.f32.vlgmr.msra.gmra.mrb[2].mxu1 %v360_v46 }
 0x3b6   :  { %v453_v52 = vpop.f32.mrb[2].mxu1 }
 0x3b7   :  { %v454_v53 = vadd.f32 %v577_v51, %v453_v52  ;;  %v759_v54 = vpop.f32.mrb[3].mxu1 }
 0x3b9   :  { %v457_v1 = vmax.f32 %v454_v53, 0.0 }
 0x3bb   :  { %793 = vmatmul.mubr.f32.vlgmr.msra.gmra.mrb[4].mxu0 %v457_v1 }
 0x48e   :  { %v549_v56 = vpop.f32.mrb[4].mxu0 }
 0x48f   :  { %v550_v57 = vadd.f32 %v579_v55, %v549_v56  ;;  %v794_v58 = vpop.f32.mrb[5].mxu0 }
 0x491   :  { %553 = vst [vmem:[#allocation11] sm:$0xff] %v550_v57 }
 0x492   :  { %1023 = shalt.err (!%p1020_p2)
}
 0x493   :  { %s1024_s26 = scalar_lea.hbm %s1239_s7, 128 }
 0x494   :  { %p1025_p3 = scmp.ne.s32.totalorder %s1239_s7, %s1024_s26  ;;  %p1028_p4 = scmp.lt.u32.totalorder %s1024_s26, %s1239_s7 }
 0x496   :  { %p1030_p5 = pnand %p1028_p4, %p1025_p3 }
 0x498   :  { %1033 = shalt.err (!%p1030_p5)
}
 0x499   :  { %563 = dma.vmem_to_hbm [thread:$0]  %s561_s22, 128, %s1239_s7, [#allocation4]  }
 0x49a   :  { %1040 = dma.done.wait [#allocation4], 128  }
 0x49b   :  { %1041 = vsyncadd [#allocation4], 4294967168 }
 0x49c   :  { %567 = vsyncpa [#allocation3], 1 }
 0x49d   :  { %568 = vsyncpa [#allocation6], 1 }
 0x49e   :  { %569 = vsyncpa [#allocation9], 1 }
 0x49f   :  { %570 = vsyncpa [#allocation4], 1 }

</bundles_post_ra>
